<compile_context>
chip_gen: v7x
topology: tpu7x:2x2x1
jax: 0.10.0
libtpu: 0.0.40
codegen_flags: <defaults>
</compile_context>

<pallas_src>
import functools

import jax
import jax.numpy as jnp
from jax.experimental import pallas as pl
from jax.experimental.pallas import tpu as pltpu

_LANE = 128
_TS_MAX = 4096  # max sublanes per spatial tile (2 MiB per f32 input block)


def _round_up(x, m):
    return ((x + m - 1) // m) * m


def _sublane_multiple(dtype):
    # Minimum sublane packing per dtype (f32: 8, bf16: 16, int8/fp8: 32).
    return {8: 8, 4: 8, 2: 16, 1: 32}[jnp.dtype(dtype).itemsize]


def _iou_kernel(pred_ref, tgt_ref, iand_ref, s_ref, acc_tp_ref, acc_s_ref,
                *, ts, n_sub, n_per, has_tail):
    split = pl.program_id(0)
    j = pl.program_id(2)

    # Reset the per-(split, image) accumulators at the start of every image.
    @pl.when(j == 0)
    def _():
        acc_tp_ref[...] = jnp.zeros_like(acc_tp_ref)
        acc_s_ref[...] = jnp.zeros_like(acc_s_ref)

    p = pred_ref[0].astype(jnp.float32)  # (ts, 128)
    t = tgt_ref[0].astype(jnp.float32)   # (ts, 128)
    tp = t * p
    sp = t + p

    def _fold(x):
        # (ts,128) -> (8,128): layout-preserving split + per-vreg VALU adds.
        return x.reshape(ts // 8, 8, _LANE).sum(axis=0)

    def _accumulate(tp_v, sp_v):
        acc_tp_ref[...] += _fold(tp_v)
        acc_s_ref[...] += _fold(sp_v)

    if has_tail:
        # Rows of this block that are inside the real array (the last block
        # over-reads; do NOT rely on Pallas zero-filling out-of-bounds data).
        valid = n_sub - (split * n_per + j) * ts

        @pl.when(valid >= ts)
        def _():
            _accumulate(tp, sp)

        @pl.when(valid < ts)
        def _():
            rows = jax.lax.broadcasted_iota(jnp.int32, (ts, _LANE), 0)
            m = rows < valid
            _accumulate(jnp.where(m, tp, 0.0), jnp.where(m, sp, 0.0))
    else:
        _accumulate(tp, sp)

    # Epilogue: one cross-lane reduce per image; the scalar combine (1 - i/u)
    # happens in the JAX wrapper.
    @pl.when(j == n_per - 1)
    def _():
        iand_ref[...] = jnp.full(iand_ref.shape, jnp.sum(acc_tp_ref[...]),
                                 jnp.float32)
        s_ref[...] = jnp.full(s_ref.shape, jnp.sum(acc_s_ref[...]),
                              jnp.float32)


def iou_loss(pred, target, *, ts_max=_TS_MAX):
    """Pallas implementation of FSCFNet _iou / IOU.forward (NCHW inputs)."""
    assert pred.shape == target.shape
    B = pred.shape[0]
    N = 1
    for d in pred.shape[1:]:
        N *= d

    sub = max(_sublane_multiple(pred.dtype), _sublane_multiple(target.dtype))
    n_sub = pl.cdiv(N, _LANE)  # rows of 128 lanes needed

    def _as_lanes(x):
        xf = x.reshape(B, N)
        if N % _LANE != 0:
            # Rare fallback: pad only to the next lane multiple (zeros do not
            # change any of the sums).  When N % 128 == 0 this whole function
            # is a zero-copy reshape (no HBM traffic before the kernel).
            xf = jnp.pad(xf, ((0, 0), (0, n_sub * _LANE - N)))
        return xf.reshape(B, n_sub, _LANE)

    pred_r = _as_lanes(pred)
    tgt_r = _as_lanes(target)

    ts = min(_round_up(ts_max, sub), _round_up(n_sub, sub))
    n_inner = pl.cdiv(n_sub, ts)
    has_tail = (n_sub % ts) != 0

    # Split the spatial reduction across a leading parallel axis when the
    # batch alone cannot keep both v7x TensorCores busy.
    splits = 2 if (B == 1 and n_inner >= 2 and n_inner % 2 == 0) else 1
    n_per = n_inner // splits

    kernel = functools.partial(
        _iou_kernel, ts=ts, n_sub=n_sub, n_per=n_per, has_tail=has_tail)

    itemsize = jnp.dtype(pred_r.dtype).itemsize
    cost = pl.CostEstimate(
        flops=int(4 * B * n_sub * _LANE),
        transcendentals=0,
        bytes_accessed=int(2 * B * n_sub * _LANE * itemsize
                           + 2 * splits * B * 8 * _LANE * 4),
    )

    out_shape = jax.ShapeDtypeStruct((splits, B, 8, _LANE), jnp.float32)
    iand_p, s_p = pl.pallas_call(
        kernel,
        out_shape=(out_shape, out_shape),
        grid=(splits, B, n_per),
        in_specs=[
            pl.BlockSpec((1, ts, _LANE), lambda s, b, j: (b, s * n_per + j, 0)),
            pl.BlockSpec((1, ts, _LANE), lambda s, b, j: (b, s * n_per + j, 0)),
        ],
        out_specs=(
            pl.BlockSpec((1, 1, 8, _LANE), lambda s, b, j: (s, b, 0, 0)),
            pl.BlockSpec((1, 1, 8, _LANE), lambda s, b, j: (s, b, 0, 0)),
        ),
        scratch_shapes=[
            pltpu.VMEM((8, _LANE), jnp.float32),  # partial sum of t*p
            pltpu.VMEM((8, _LANE), jnp.float32),  # partial sum of t+p
        ],
        compiler_params=pltpu.CompilerParams(
            dimension_semantics=("parallel", "parallel", "arbitrary"),
            vmem_limit_bytes=32 * 1024 * 1024,
        ),
        cost_estimate=cost,
    )(pred_r, tgt_r)

    iand = jnp.sum(iand_p[:, :, 0, 0], axis=0)        # (B,)
    ior = jnp.sum(s_p[:, :, 0, 0], axis=0) - iand      # sum(t)+sum(p)-iand
    # NOTE: ior == 0 (all-zero pred and target) yields NaN, matching the
    # PyTorch reference.
    return jnp.sum(1.0 - iand / ior) / B


def _iou_ref(pred, target):
    # Pure-JAX reference mirroring the PyTorch loop semantics.
    b = pred.shape[0]
    iand = jnp.sum(target * pred, axis=(1, 2, 3))
    ior = jnp.sum(target, axis=(1, 2, 3)) + jnp.sum(pred, axis=(1, 2, 3)) - iand
    return jnp.sum(1.0 - iand / ior) / b


def _make_inputs(key, shape):
    k1, k2 = jax.random.split(key)
    pred = jax.nn.sigmoid(jax.random.normal(k1, shape, dtype=jnp.float32))
    target = (jax.random.uniform(k2, shape) > 0.5).astype(jnp.float32)
    return pred, target


if __name__ == "__main__":
    key = jax.random.PRNGKey(0)

    # Main case: N % 128 == 0 -> zero-copy reshape path, no padding.
    pred, target = _make_inputs(key, (2, 4, 16, 16))
    loss = jax.block_until_ready(iou_loss(pred, target))
    ref = jax.block_until_ready(_iou_ref(pred, target))
    assert jnp.allclose(loss, ref, rtol=1e-5, atol=1e-5), (loss, ref)

    # Tail-mask + lane-pad fallback path (N = 1200, n_sub = 10, ts = 16).
    pred2, target2 = _make_inputs(jax.random.PRNGKey(1), (2, 3, 20, 20))
    loss2 = jax.block_until_ready(iou_loss(pred2, target2))
    ref2 = jax.block_until_ready(_iou_ref(pred2, target2))
    assert jnp.allclose(loss2, ref2, rtol=1e-5, atol=1e-5), (loss2, ref2)

    # B == 1 core-split path (splits=2) + multi-step accumulation (small ts).
    pred3, target3 = _make_inputs(jax.random.PRNGKey(2), (1, 1, 64, 64))
    loss3 = jax.block_until_ready(iou_loss(pred3, target3, ts_max=8))
    ref3 = jax.block_until_ready(_iou_ref(pred3, target3))
    assert jnp.allclose(loss3, ref3, rtol=1e-5, atol=1e-5), (loss3, ref3)

    print("KERNEL_OK")
</pallas_src>

<mosaic_0001>
module attributes {stable_mosaic.version = 11 : i64} {
  func.func @_iou_kernel(%arg0: i32, %arg1: i32, %arg2: i32, %arg3: memref<1x8x128xf32, #tpu.memory_space<vmem>>, %arg4: memref<1x8x128xf32, #tpu.memory_space<vmem>>, %arg5: memref<1x1x8x128xf32, #tpu.memory_space<vmem>>, %arg6: memref<1x1x8x128xf32, #tpu.memory_space<vmem>>, %arg7: memref<8x128xf32, #tpu.memory_space<vmem>>, %arg8: memref<8x128xf32, #tpu.memory_space<vmem>>) attributes {dimension_semantics = [#tpu.dimension_semantics<parallel>, #tpu.dimension_semantics<parallel>, #tpu.dimension_semantics<arbitrary>], iteration_bounds = array<i64: 1, 2, 1>, scalar_prefetch = 0 : i64, scratch_operands = 2 : i64, tpu.core_type = #tpu.core_type<tc>, window_params = [{transform_indices = @transform_0, window_bounds = array<i64: 1, 8, 128>}, {transform_indices = @transform_1, window_bounds = array<i64: 1, 8, 128>}, {transform_indices = @transform_2, window_bounds = array<i64: 1, 1, 8, 128>}, {transform_indices = @transform_3, window_bounds = array<i64: 1, 1, 8, 128>}]} {
    %c0_i32 = arith.constant 0 : i32
    %0 = arith.cmpi eq, %arg2, %c0_i32 : i32
    %1 = arith.extui %0 : i1 to i32
    %c0_i32_0 = arith.constant 0 : i32
    %2 = arith.cmpi ne, %1, %c0_i32_0 : i32
    scf.if %2 {
      %cst_17 = arith.constant 0.000000e+00 : f32
      %22 = vector.broadcast %cst_17 : f32 to vector<8x128xf32>
      %c0_18 = arith.constant 0 : index
      %c0_19 = arith.constant 0 : index
      %23 = vector.load %arg7[%c0_18, %c0_19] : memref<8x128xf32, #tpu.memory_space<vmem>>, vector<8x128xf32>
      tpu.vector_store %arg7[%c0_18, %c0_19], %22 {strides = array<i32>} : memref<8x128xf32, #tpu.memory_space<vmem>>, vector<8x128xf32>,
      %cst_20 = arith.constant 0.000000e+00 : f32
      %24 = vector.broadcast %cst_20 : f32 to vector<8x128xf32>
      %c0_21 = arith.constant 0 : index
      %c0_22 = arith.constant 0 : index
      %25 = vector.load %arg8[%c0_21, %c0_22] : memref<8x128xf32, #tpu.memory_space<vmem>>, vector<8x128xf32>
      tpu.vector_store %arg8[%c0_21, %c0_22], %24 {strides = array<i32>} : memref<8x128xf32, #tpu.memory_space<vmem>>, vector<8x128xf32>,
    } else {
    }
    %c0 = arith.constant 0 : index
    %c0_1 = arith.constant 0 : index
    %c0_2 = arith.constant 0 : index
    %3 = vector.load %arg3[%c0, %c0_1, %c0_2] : memref<1x8x128xf32, #tpu.memory_space<vmem>>, vector<1x8x128xf32>
    %4 = vector.shape_cast %3 : vector<1x8x128xf32> to vector<8x128xf32>
    %c0_3 = arith.constant 0 : index
    %c0_4 = arith.constant 0 : index
    %c0_5 = arith.constant 0 : index
    %5 = vector.load %arg4[%c0_3, %c0_4, %c0_5] : memref<1x8x128xf32, #tpu.memory_space<vmem>>, vector<1x8x128xf32>
    %6 = vector.shape_cast %5 : vector<1x8x128xf32> to vector<8x128xf32>
    %7 = arith.mulf %6, %4 : vector<8x128xf32>
    %8 = arith.addf %6, %4 : vector<8x128xf32>
    %c0_6 = arith.constant 0 : index
    %c0_7 = arith.constant 0 : index
    %9 = vector.load %arg7[%c0_6, %c0_7] : memref<8x128xf32, #tpu.memory_space<vmem>>, vector<8x128xf32>
    %10 = vector.shape_cast %7 : vector<8x128xf32> to vector<1x8x128xf32>
    %cst = arith.constant dense<0.000000e+00> : vector<8x128xf32>
    %11 = vector.multi_reduction <add>, %10, %cst [0] : vector<1x8x128xf32> to vector<8x128xf32>
    %12 = arith.addf %9, %11 : vector<8x128xf32>
    %c0_8 = arith.constant 0 : index
    %c0_9 = arith.constant 0 : index
    %13 = vector.load %arg7[%c0_8, %c0_9] : memref<8x128xf32, #tpu.memory_space<vmem>>, vector<8x128xf32>
    tpu.vector_store %arg7[%c0_8, %c0_9], %12 {strides = array<i32>} : memref<8x128xf32, #tpu.memory_space<vmem>>, vector<8x128xf32>,
    %c0_10 = arith.constant 0 : index
    %c0_11 = arith.constant 0 : index
    %14 = vector.load %arg8[%c0_10, %c0_11] : memref<8x128xf32, #tpu.memory_space<vmem>>, vector<8x128xf32>
    %15 = vector.shape_cast %8 : vector<8x128xf32> to vector<1x8x128xf32>
    %cst_12 = arith.constant dense<0.000000e+00> : vector<8x128xf32>
    %16 = vector.multi_reduction <add>, %15, %cst_12 [0] : vector<1x8x128xf32> to vector<8x128xf32>
    %17 = arith.addf %14, %16 : vector<8x128xf32>
    %c0_13 = arith.constant 0 : index
    %c0_14 = arith.constant 0 : index
    %18 = vector.load %arg8[%c0_13, %c0_14] : memref<8x128xf32, #tpu.memory_space<vmem>>, vector<8x128xf32>
    tpu.vector_store %arg8[%c0_13, %c0_14], %17 {strides = array<i32>} : memref<8x128xf32, #tpu.memory_space<vmem>>, vector<8x128xf32>,
    %c0_i32_15 = arith.constant 0 : i32
    %19 = arith.cmpi eq, %arg2, %c0_i32_15 : i32
    %20 = arith.extui %19 : i1 to i32
    %c0_i32_16 = arith.constant 0 : i32
    %21 = arith.cmpi ne, %20, %c0_i32_16 : i32
    scf.if %21 {
      %c0_17 = arith.constant 0 : index
      %c0_18 = arith.constant 0 : index
      %22 = vector.load %arg7[%c0_17, %c0_18] : memref<8x128xf32, #tpu.memory_space<vmem>>, vector<8x128xf32>
      %23 = vector.shape_cast %22 : vector<8x128xf32> to vector<1x8x128xf32>
      %cst_19 = arith.constant dense<0.000000e+00> : vector<1xf32>
      %24 = vector.multi_reduction <add>, %23, %cst_19 [1, 2] : vector<1x8x128xf32> to vector<1xf32>
      %25 = vector.shape_cast %24 : vector<1xf32> to vector<1x1x1xf32>
      %26 = vector.extract %25[0, 0, 0] : f32 from vector<1x1x1xf32>
      %27 = vector.broadcast %26 : f32 to vector<1x1x8x128xf32>
      %c0_20 = arith.constant 0 : index
      %c0_21 = arith.constant 0 : index
      %c0_22 = arith.constant 0 : index
      %c0_23 = arith.constant 0 : index
      %28 = vector.load %arg5[%c0_20, %c0_21, %c0_22, %c0_23] : memref<1x1x8x128xf32, #tpu.memory_space<vmem>>, vector<1x1x8x128xf32>
      tpu.vector_store %arg5[%c0_20, %c0_21, %c0_22, %c0_23], %27 {strides = array<i32>} : memref<1x1x8x128xf32, #tpu.memory_space<vmem>>, vector<1x1x8x128xf32>,
      %c0_24 = arith.constant 0 : index
      %c0_25 = arith.constant 0 : index
      %29 = vector.load %arg8[%c0_24, %c0_25] : memref<8x128xf32, #tpu.memory_space<vmem>>, vector<8x128xf32>
      %30 = vector.shape_cast %29 : vector<8x128xf32> to vector<1x8x128xf32>
      %cst_26 = arith.constant dense<0.000000e+00> : vector<1xf32>
      %31 = vector.multi_reduction <add>, %30, %cst_26 [1, 2] : vector<1x8x128xf32> to vector<1xf32>
      %32 = vector.shape_cast %31 : vector<1xf32> to vector<1x1x1xf32>
      %33 = vector.extract %32[0, 0, 0] : f32 from vector<1x1x1xf32>
      %34 = vector.broadcast %33 : f32 to vector<1x1x8x128xf32>
      %c0_27 = arith.constant 0 : index
      %c0_28 = arith.constant 0 : index
      %c0_29 = arith.constant 0 : index
      %c0_30 = arith.constant 0 : index
      %35 = vector.load %arg6[%c0_27, %c0_28, %c0_29, %c0_30] : memref<1x1x8x128xf32, #tpu.memory_space<vmem>>, vector<1x1x8x128xf32>
      tpu.vector_store %arg6[%c0_27, %c0_28, %c0_29, %c0_30], %34 {strides = array<i32>} : memref<1x1x8x128xf32, #tpu.memory_space<vmem>>, vector<1x1x8x128xf32>,
    } else {
    }
    return
  }
  func.func @transform_0(%arg0: i32, %arg1: i32, %arg2: i32) -> (i32, i32, i32) {
    %c1_i32 = arith.constant 1 : i32
    %0 = arith.muli %arg0, %c1_i32 : i32
    %1 = arith.addi %0, %arg2 : i32
    %c0_i32 = arith.constant 0 : i32
    %c0_i32_0 = arith.constant 0 : i32
    return %arg1, %1, %c0_i32 : i32, i32, i32
  }
  func.func @transform_1(%arg0: i32, %arg1: i32, %arg2: i32) -> (i32, i32, i32) {
    %c1_i32 = arith.constant 1 : i32
    %0 = arith.muli %arg0, %c1_i32 : i32
    %1 = arith.addi %0, %arg2 : i32
    %c0_i32 = arith.constant 0 : i32
    %c0_i32_0 = arith.constant 0 : i32
    return %arg1, %1, %c0_i32 : i32, i32, i32
  }
  func.func @transform_2(%arg0: i32, %arg1: i32, %arg2: i32) -> (i32, i32, i32, i32) {
    %c0_i32 = arith.constant 0 : i32
    %c0_i32_0 = arith.constant 0 : i32
    %c0_i32_1 = arith.constant 0 : i32
    return %arg0, %arg1, %c0_i32, %c0_i32_0 : i32, i32, i32, i32
  }
  func.func @transform_3(%arg0: i32, %arg1: i32, %arg2: i32) -> (i32, i32, i32, i32) {
    %c0_i32 = arith.constant 0 : i32
    %c0_i32_0 = arith.constant 0 : i32
    %c0_i32_1 = arith.constant 0 : i32
    return %arg0, %arg1, %c0_i32, %c0_i32_0 : i32, i32, i32, i32
  }
}

</mosaic_0001>

<bundles_post_ra>
// kernel: tpu_custom_call.1
= control target key start
LH: loop header
LB: loop body
LE: loop exit
PB: predicated region body
PF: predicated region fallthrough
CT: control target
= control target key end

     0   :  { %9 = vsyncpa [#allocation5], 0  ;;  %s1058_s0 = inlined_call_operand.hbm [shape: f32[2,8,128], index: 0, kind: input, shape index: {}]   ;;  %s1059_s1 = inlined_call_operand.hbm [shape: f32[2,8,128], index: 1, kind: input, shape index: {}]   ;;  %s1060_s2 = inlined_call_operand.hbm [shape: f32[1,2,8,128], index: 2, kind: output, shape index: {0}]   ;;  %s1061_s3 = inlined_call_operand.hbm [shape: f32[1,2,8,128], index: 3, kind: output, shape index: {1}]  }
   0x1   :  { %11 = vsyncpa [#allocation5 + $0x1], 0 }
   0x2   :  { %12 = vsyncpa [#allocation8], 0 }
   0x3   :  { %14 = vsyncpa [#allocation8 + $0x1], 0 }
   0x4   :  { %15 = vsyncpa [#allocation6], 0 }
   0x5   :  { %17 = vsyncpa [#allocation6 + $0x1], 0 }
   0x6   :  { %18 = vsyncpa [#allocation11], 0 }
   0x7   :  { %20 = vsyncpa [#allocation11 + $0x1], 0  ;;  %s795_s12 = smov 0   ;;  %s797_s13 = smov 0  }
   0x8   :  { %s799_s14 = smov 0   ;;  %s801_s15 = smov 0  }
   0x9   :  { %s803_s16 = smov 0   ;;  %s805_s17 = smov 0  }
   0xa LB: > { %s496_s18 = sadd.s32 4294967295, %s769_s17   ;;  %s497_s19 = sadd.s32 4294967294, %s769_s17   ;;  %s769_s17 = sphi %s805_s17, %s26_s17   ;;  %s765_s16 = sphi %s803_s16, %s1081_s16   ;;  %s761_s15 = sphi %s801_s15, %s1080_s15   ;;  %s757_s14 = sphi %s799_s14, %s1079_s14   ;;  %s753_s13 = sphi %s797_s13, %s1078_s13   ;;  %s749_s12 = sphi %s795_s12, %s1077_s12  }
   0xb   : > { %s41_s20 = sadd.s32 1, %s765_s16  ;;  %s56_s21 = sadd.s32 1, %s757_s14 }
   0xc   : > { %p43_p0 = scmp.ge.s32.totalorder %s41_s20, 2  ;;  %p63_p1 = scmp.ne.s32.totalorder %s757_s14, %s753_s13 }
   0xd   : > { %p64_p2 = scmp.eq.s32.totalorder %s769_s17, 0  ;;  %p69_p3 = scmp.ne.s32.totalorder %s753_s13, %s749_s12 }
   0xe   : > { %s1083_s20 = smov (%p43_p0, %s41_s20), 0  ;;  %p70_p5 = scmp.eq.s32.totalorder %s496_s18, 0 }
   0xf   : > { %p836_p4 = por %p64_p2, %p63_p1  ;;  %s51_s23 = ssub.s32 %s765_s16, %s1083_s20 }
  0x10   : > { %p125_p6 = scmp.eq.s32.totalorder %s496_s18, 1  ;;  %p54_p7 = scmp.eq.s32.totalorder %s51_s23, 0 }
  0x11   : > { %p842_p8 = por %p70_p5, %p69_p3  ;;  %p131_p10 = scmp.eq.s32.totalorder %s497_s19, 1 }
  0x12   : > { %p846_p9 = por %p125_p6, %p63_p1  ;;  %p541_p13 = scmp.lt.s32.totalorder %s769_s17, 2 }
  0x13   : > { %s1065_s24 = scalar_select %p842_p8, 1, 0 }
  0x14   : > { %s1066_s25 = scalar_select %p846_p9, 1, 0 }
  0x15   : > { %s851_s26 = scalar_select %p54_p7, %s757_s14, %s56_s21  }
  0x16   : > { %p853_p11 = por %p131_p10, %p69_p3  ;;  %s860_s28 = sand.u32 1, %s757_s14  }
  0x17   : > { %s500_s29 = sshll.u32 %s860_s28, 3  ;;  %s501_s30 = sshll.u32 %s765_s16, 7 }
  0x18   : > { %s1067_s27 = scalar_select %p853_p11, 1, 0 }
  0x19   : > { %s869_s6 = scalar_lea.hbm %s1058_s0, %s501_s30  ;;  %s183_s7 = scalar_lea.vmem [#allocation4], %s500_s29 }
  0x1a   : > { %s192_s8 = sshll.u32 %s183_s7, 4  ;;  %p877_p0 = pnand %p541_p13, %p836_p4  ;;  %s873_s8 = int_to_ptr.vmem [resolvable:$true] %s192_s8 }
  0x1b   : > { %s180_s10 = scalar_lea.sflag [#allocation5], %s860_s28  ;;  %s591_s11 = scalar_lea.hbm %s869_s6, 128 }
  0x1c   : > { %p592_p3 = scmp.ne.s32.totalorder %s869_s6, %s591_s11  ;;  %p593_p5 = pneg %p877_p0 }
  0x1d   : > { %s596_s21 = scalar_lea.hbm %s1058_s0, 256  ;;  %p597_p4 = scmp.lt.u32.totalorder %s869_s6, %s1058_s0 }
  0x1e   : > { %p594_p6 = pnand %p593_p5, %p592_p3  ;;  %p598_p10 = scmp.lt.u32.totalorder %s596_s21, %s591_s11 }
  0x1f   : > { %p600_p12 = scmp.lt.u32.totalorder %s591_s11, %s869_s6 }
  0x20   : > { %p595_p7 = pneg %p594_p6  ;;  %p599_p13 = por %p598_p10, %p597_p4 }
  0x22   : > { %p601_p1 = por %p600_p12, %p599_p13 }
  0x24   : > { %p602_p2 = pnand %p601_p1, %p595_p7 }
  0x26   : > { %605 = shalt.err (!%p602_p2)
}
  0x27   : > { %s606_s4 = scalar_lea.vmem %s873_s8, 128  ;;  %s771_s5 = smov [#allocation4]  }
  0x28   : > { %p607_p3 = scmp.ne.s32.totalorder %s873_s8, %s606_s4  ;;  %s611_s7 = sshll.u32 %s771_s5, 4  ;;  %s612_s7 = int_to_ptr.vmem [resolvable:$false] %s611_s7 }
  0x29   : > { %s613_s18 = scalar_lea.vmem %s612_s7, 256  ;;  %p614_p9 = scmp.lt.s32.totalorder %s873_s8, %s612_s7 }
  0x2a   : > { %p609_p6 = pnand %p607_p3, %p593_p5  ;;  %p615_p4 = scmp.lt.s32.totalorder %s613_s18, %s606_s4 }
  0x2c   : > { %p610_p11 = pneg %p609_p6  ;;  %p616_p10 = por %p615_p4, %p614_p9 }
  0x2e   : > { %p617_p12 = pnand %p616_p10, %p610_p11 }
  0x30   : > { %620 = shalt.err (!%p617_p12)
}
  0x31   : > { %530 = dma.hbm_to_vmem [thread:$0]  (!%p877_p0), %s869_s6, 128, %s873_s8, %s180_s10  }
  0x32   : > { %p1069_p1 = scmp.lt.s32.totalorder %s769_s17, 3  ;;  %p1070_p2 = scmp.ge.s32.totalorder %s769_s17, 1 }
  0x33   : > { %s922_s22 = scalar_lea.hbm %s1059_s1, %s501_s30  ;;  %s203_s23 = scalar_lea.vmem [#allocation7], %s500_s29 }
  0x34   : > { %p913_p7 = pnand %p1070_p2, %p1069_p1  ;;  %s212_s4 = sshll.u32 %s203_s23, 4  ;;  %s213_s4 = int_to_ptr.vmem [resolvable:$true] %s212_s4 }
  0x35   : > { %s200_s6 = scalar_lea.sflag [#allocation8], %s860_s28  ;;  %s621_s8 = scalar_lea.hbm %s922_s22, 128 }
  0x36   : > { %s1071_s11 = scalar_select %p913_p7, 1, 0 }
  0x37   : > { %p622_p9 = scmp.ne.s32.totalorder %s922_s22, %s621_s8  ;;  %s626_s30 = scalar_lea.hbm %s1059_s1, 256 }
  0x38   : > { %p627_p3 = scmp.lt.u32.totalorder %s922_s22, %s1059_s1  ;;  %p628_p6 = scmp.lt.u32.totalorder %s626_s30, %s621_s8 }
  0x39   : > { %p624_p11 = pnand %p622_p9, %p593_p5  ;;  %p630_p10 = scmp.lt.u32.totalorder %s621_s8, %s922_s22 }
  0x3a   : > { %p629_p4 = por %p628_p6, %p627_p3 }
  0x3b   : > { %p625_p13 = pneg %p624_p11 }
  0x3c   : > { %p631_p12 = por %p630_p10, %p629_p4 }
  0x3e   : > { %p632_p1 = pnand %p631_p12, %p625_p13 }
  0x40   : > { %635 = shalt.err (!%p632_p1)
}
  0x41   : > { %s636_s28 = scalar_lea.vmem %s213_s4, 128  ;;  %s772_s29 = smov [#allocation7]  }
  0x42   : > { %p637_p2 = scmp.ne.s32.totalorder %s213_s4, %s636_s28  ;;  %s641_s19 = sshll.u32 %s772_s29, 4  ;;  %s642_s19 = int_to_ptr.vmem [resolvable:$false] %s641_s19 }
  0x43   : > { %s643_s21 = scalar_lea.vmem %s642_s19, 256  ;;  %p644_p8 = scmp.lt.s32.totalorder %s213_s4, %s642_s19 }
  0x44   : > { %p639_p9 = pnand %p637_p2, %p593_p5  ;;  %p645_p7 = scmp.lt.s32.totalorder %s643_s21, %s636_s28 }
  0x46   : > { %p640_p11 = pneg %p639_p9  ;;  %p646_p3 = por %p645_p7, %p644_p8 }
  0x48   : > { %p647_p6 = pnand %p646_p3, %p640_p11 }
  0x4a   : > { %650 = shalt.err (!%p647_p6)
}
  0x4b   : > { %533 = dma.hbm_to_vmem [thread:$0]  (!%p877_p0), %s922_s22, 128, %s213_s4, %s200_s6  }
  0x4c   : > { %p1072_p13 = scmp.ne.s32.totalorder %s1071_s11, 0 }
  0x4d   : > { %s949_s23 = sand.u32 (!%p1072_p13), 1, %s753_s13   ;;  %p1073_p8 = scmp.ne.s32.totalorder (!%p1072_p13), %s1065_s24, 0 }
  0x4e   : > { %221 = sbr.rel (%p1072_p13) target bundleno = 334 (0x14e), region = 28  ;;  %s952_s8 = sshll.u32 (!%p1072_p13), %s949_s23, 3 }
  0x4f   : > { %s224_s10 = scalar_lea.sflag (!%p1072_p13), [#allocation5], %s949_s23  ;;  %s227_s5 = scalar_lea.vmem (!%p1072_p13), [#allocation4], %s952_s8 }
  0x55   : > { %732 = dma.done.wait (%p1073_p8), %s224_s10, 128  }
  0x56   : > { %734 = vsyncadd (%p1073_p8), %s224_s10, 4294967168  ;;  %s233_s9 = scalar_lea.sflag [#allocation8], %s949_s23  ;;  %s236_s11 = scalar_lea.vmem [#allocation7], %s952_s8 }
  0x57   : > { %736 = dma.done.wait (%p1073_p8), %s233_s9, 128  }
  0x58   : > { %738 = vsyncadd (%p1073_p8), %s233_s9, 4294967168  ;;  %v277_v0 = vld [vmem:[%s227_s5] sm:$0xff]  ;;  %v278_v1 = vld [vmem:[%s236_s11] sm:$0xff]  ;;  %s511_s24 = sshll.u32 %s761_s15, 7  ;;  %s261_s22 = scalar_lea.vmem [#allocation9], %s952_s8 }
  0x59   : > { %v279_v2 = vmul.f32 %v278_v1, %v277_v0  ;;  %v280_v3 = vadd.f32 %v278_v1, %v277_v0  ;;  %s337_s4 = sshll.u32 %s261_s22, 4  ;;  %s268_s6 = scalar_lea.vmem [#allocation10], %s952_s8  ;;  %s978_s4 = int_to_ptr.vmem [resolvable:$true] %s337_s4 }
  0x5a   : > { %s352_s30 = sshll.u32 %s268_s6, 4  ;;  %s976_s28 = scalar_lea.hbm %s1060_s2, %s511_s24  ;;  %s980_s30 = int_to_ptr.vmem [resolvable:$true] %s352_s30 }
  0x5b   : > { %293 = vadd.xlane.f32.xlu0 %v279_v2  ;;  %s317_s19 = scalar_lea.sflag [#allocation6], %s949_s23  ;;  %s651_s21 = scalar_lea.vmem %s978_s4, 128 }
  0x5c   : > { %p652_p0 = scmp.ne.s32.totalorder %s978_s4, %s651_s21  ;;  %p1074_p5 = scmp.ne.s32.totalorder %s1066_s25, 0 }
  0x5d   : > { %s773_s10 = smov [#allocation9]  }
  0x5e   : > { %p653_p7 = pnand %p652_p0, %p1074_p5  ;;  %s655_s5 = sshll.u32 %s773_s10, 4  ;;  %s656_s5 = int_to_ptr.vmem [resolvable:$false] %s655_s5 }
  0x5f   : > { %305 = vadd.xlane.f32.xlu0 %v280_v3  ;;  %s657_s9 = scalar_lea.vmem %s656_s5, 256  ;;  %p658_p10 = scmp.lt.s32.totalorder %s978_s4, %s656_s5 }
  0x60   : > { %p654_p4 = pneg %p653_p7  ;;  %p659_p12 = scmp.lt.s32.totalorder %s657_s9, %s651_s21 }
  0x62   : > { %p660_p1 = por %p659_p12, %p658_p10 }
  0x64   : > { %p661_p2 = pnand %p660_p1, %p654_p4 }
  0xe8   : > { %v294_v4 = vpop.xlane.xlu0 %293 }
  0xe9   : > { %v295_v5 = vrot.slane %v294_v4, 4 }
  0xeb   : > { %v296_v6 = vadd.f32 %v295_v5, %v294_v4 }
  0xec   : > { %v306_v7 = vpop.xlane.xlu0 %305 }
  0xed   : > { %v297_v8 = vrot.slane %v296_v6, 2  ;;  %v307_v9 = vrot.slane %v306_v7, 4 }
  0xef   : > { %v308_v10 = vadd.f32 %v307_v9, %v306_v7  ;;  %v298_v11 = vadd.f32 %v297_v8, %v296_v6 }
  0xf1   : > { %v309_v12 = vrot.slane %v308_v10, 2  ;;  %v299_v13 = vrot.slane %v298_v11, 1 }
  0xf3   : > { %v310_v14 = vadd.f32 %v309_v12, %v308_v10  ;;  %v300_v15 = vadd.f32 %v299_v13, %v298_v11 }
  0xf5   : > { %515 = vpush %v300_v15  ;;  %v311_v16 = vrot.slane %v310_v14, 1 }
  0xf7   : > { %v312_v17 = vadd.f32 %v311_v16, %v310_v14 }
  0xf9   : > { %517 = vpush %v312_v17 }
 0x126   : > { %s516_s29 = spop %515 }
 0x127   : > { %v302_v18 = vstv %s516_s29 }
 0x128   : > { %303 = vst [vmem:[%s261_s22] sm:$0xff] %v302_v18 }
 0x129   : > { %664 = shalt.err (!%p661_p2)
}
 0x12a   : > { %s665_s11 = scalar_lea.hbm %s976_s28, 128  ;;  %s669_s18 = scalar_lea.hbm %s1060_s2, 256 }
 0x12b   : > { %p666_p9 = scmp.ne.s32.totalorder %s976_s28, %s665_s11  ;;  %p670_p6 = scmp.lt.u32.totalorder %s976_s28, %s1060_s2 }
 0x12c   : > { %p671_p13 = scmp.lt.u32.totalorder %s669_s18, %s665_s11  ;;  %p673_p0 = scmp.lt.u32.totalorder %s665_s11, %s976_s28 }
 0x12d   : > { %p667_p11 = pnand %p666_p9, %p1074_p5 }
 0x12e   : > { %p672_p8 = por %p671_p13, %p670_p6 }
 0x12f   : > { %p668_p3 = pneg %p667_p11 }
 0x130   : > { %p674_p7 = por %p673_p0, %p672_p8 }
 0x132   : > { %p675_p4 = pnand %p674_p7, %p668_p3 }
 0x134   : > { %678 = shalt.err (!%p675_p4)
}
 0x135   : > { %523 = dma.vmem_to_hbm [thread:$0]  (%p1074_p5), %s978_s4, 128, %s976_s28, %s317_s19  }
 0x136   : > { %s518_s21 = spop %517  ;;  %s1009_s11 = scalar_lea.hbm %s1061_s3, %s511_s24 }
 0x137   : > { %v314_v19 = vstv %s518_s21  ;;  %s322_s22 = scalar_lea.sflag [#allocation11], %s949_s23  ;;  %s679_s7 = scalar_lea.vmem %s980_s30, 128 }
 0x138   : > { %315 = vst [vmem:[%s268_s6] sm:$0xff] %v314_v19  ;;  %p680_p10 = scmp.ne.s32.totalorder %s980_s30, %s679_s7  ;;  %s774_s18 = smov [#allocation10]  }
 0x139   : > { %s683_s29 = sshll.u32 %s774_s18, 4  ;;  %s684_s29 = int_to_ptr.vmem [resolvable:$false] %s683_s29 }
 0x13a   : > { %p681_p12 = pnand %p680_p10, %p1074_p5  ;;  %s685_s4 = scalar_lea.vmem %s684_s29, 256 }
 0x13b   : > { %p686_p2 = scmp.lt.s32.totalorder %s980_s30, %s684_s29  ;;  %p687_p9 = scmp.lt.s32.totalorder %s685_s4, %s679_s7 }
 0x13c   : > { %p682_p1 = pneg %p681_p12 }
 0x13d   : > { %p688_p11 = por %p687_p9, %p686_p2 }
 0x13f   : > { %p689_p3 = pnand %p688_p11, %p682_p1 }
 0x141   : > { %692 = shalt.err (!%p689_p3)
}
 0x142   : > { %s693_s15 = scalar_lea.hbm %s1009_s11, 128  ;;  %s697_s24 = scalar_lea.hbm %s1061_s3, 256 }
 0x143   : > { %p694_p6 = scmp.ne.s32.totalorder %s1009_s11, %s693_s15  ;;  %p698_p0 = scmp.lt.u32.totalorder %s1009_s11, %s1061_s3 }
 0x144   : > { %p699_p7 = scmp.lt.u32.totalorder %s697_s24, %s693_s15  ;;  %p701_p10 = scmp.lt.u32.totalorder %s693_s15, %s1009_s11 }
 0x145   : > { %p695_p13 = pnand %p694_p6, %p1074_p5 }
 0x146   : > { %p700_p4 = por %p699_p7, %p698_p0 }
 0x147   : > { %p696_p8 = pneg %p695_p13 }
 0x148   : > { %p702_p12 = por %p701_p10, %p700_p4 }
 0x14a   : > { %p703_p1 = pnand %p702_p12, %p696_p8 }
 0x14c   : > { %706 = shalt.err (!%p703_p1)
}
 0x14d   : > { %524 = dma.vmem_to_hbm [thread:$0]  (%p1074_p5), %s980_s30, 128, %s1009_s11, %s322_s22  }
 0x14e PF: > { %s364_s19 = sand.u32 1, %s749_s12   ;;  %p1075_p2 = scmp.ne.s32.totalorder %s1067_s27, 0 }
 0x14f   : > { %p1076_p9 = scmp.ge.s32.totalorder %s769_s17, 2  ;;  %s365_s10 = scalar_lea.sflag [#allocation6], %s364_s19 }
 0x151   : > { %p535_p11 = pnand %p1076_p9, %p1075_p2 }
 0x153   : > { %740 = dma.done.wait (!%p535_p11), %s365_s10, 128  }
 0x154   : > { %742 = vsyncadd (!%p535_p11), %s365_s10, 4294967168  ;;  %s374_s21 = scalar_lea.sflag [#allocation11], %s364_s19 }
 0x155   : > { %744 = dma.done.wait (!%p535_p11), %s374_s21, 128  }
 0x156   : > { %746 = vsyncadd (!%p535_p11), %s374_s21, 4294967168  ;;  %s26_s17 = sadd.s32 1, %s769_s17   ;;  %s1077_s12 = smov %s753_s13 }
 0x157   : > { %p23_p3 = scmp.ge.s32.totalorder %s26_s17, 4   ;;  %s1078_s13 = smov %s757_s14 }
 0x158   : > { %s1079_s14 = smov %s851_s26  ;;  %s1080_s15 = smov %s765_s16 }
 0x159   : > { %s1081_s16 = smov %s1083_s20  ;;  %25 = sbr.rel (!%p23_p3) target bundleno = 10 (0xa), region = 111 }
 0x160   :  { %379 = vsyncpa [#allocation5], 1 }
 0x161   :  { %381 = vsyncpa [#allocation5 + $0x1], 1 }
 0x162   :  { %382 = vsyncpa [#allocation8], 1 }
 0x163   :  { %384 = vsyncpa [#allocation8 + $0x1], 1 }
 0x164   :  { %385 = vsyncpa [#allocation6], 1 }
 0x165   :  { %387 = vsyncpa [#allocation6 + $0x1], 1 }
 0x166   :  { %388 = vsyncpa [#allocation11], 1 }
 0x167   :  { %390 = vsyncpa [#allocation11 + $0x1], 1 }

</bundles_post_ra>
